<compile_context>
chip_gen: v7x
topology: tpu7x:2x2x1
jax: 0.10.0
libtpu: 0.0.40
codegen_flags: <defaults>
</compile_context>

<pallas_src>
import functools

import jax
import jax.numpy as jnp
from jax.experimental import pallas as pl
from jax.experimental.pallas import tpu as pltpu


def _cin_kernel(x_ref, gamma_ref, beta_ref, out_ref, *, eps, hw, c_blk):
    """One (batch, channel-block): instance-norm over the lane (spatial) axis."""
    # x_ref/out_ref block: (1, c_blk, hw_pad); gamma/beta block: (1, C, 1) f32.
    x = x_ref[0].astype(jnp.float32)                        # (c_blk, hw_pad)
    hw_pad = x.shape[-1]

    if c_blk == gamma_ref.shape[1]:
        # Single channel block per batch row: no slicing needed.
        gamma = gamma_ref[0]                                 # (c_blk, 1)
        beta = beta_ref[0]
    else:
        c0 = pl.multiple_of(pl.program_id(1) * c_blk, c_blk)
        gamma = gamma_ref[0, pl.ds(c0, c_blk), :]            # (c_blk, 1)
        beta = beta_ref[0, pl.ds(c0, c_blk), :]

    # Statistics in f32.  Zero padding does not perturb the sum; the variance
    # reduction masks the padded lanes explicitly.
    mean = jnp.sum(x, axis=-1, keepdims=True) * (1.0 / hw)   # (c_blk, 1)
    if hw == hw_pad:
        d = x - mean
    else:
        mask = jax.lax.broadcasted_iota(jnp.int32, x.shape, 1) < hw
        d = jnp.where(mask, x - mean, 0.0)
    # Unbiased (N-1) variance, like torch.std.  (hw==1 guarded to avoid a
    # Python ZeroDivisionError; torch would produce NaN for that degenerate case.)
    var = jnp.sum(d * d, axis=-1, keepdims=True) * (1.0 / max(hw - 1, 1))

    denom = jnp.sqrt(var) + eps
    inv = pl.reciprocal(denom, approx=True)                  # EUP slot
    inv = inv * (2.0 - denom * inv)                          # one Newton step, (c_blk,1)

    scale = gamma * inv                                      # fold affine per channel
    shift = beta - mean * scale
    out_ref[0] = (x * scale + shift).astype(out_ref.dtype)   # pad lanes sliced off later


def _sublane_tile(dtype):
    return {4: 8, 2: 16, 1: 32}.get(jnp.dtype(dtype).itemsize, 8)


def _vmem_budget_bytes():
    try:
        cap = pltpu.get_tpu_info().vmem_capacity_bytes
    except Exception:
        cap = 64 << 20          # conservative: v7x per-TC capacity
    return (cap * 3) // 4       # ~48 MiB on v7x, ~96 MiB on v5e/v6e


def _pick_c_blk(B, C, hw_pad, itemsize, sub, budget):
    """Largest sublane-aligned divisor of C fitting the VMEM budget, with
    enough grid steps to keep the pipeline (and both v7x cores) busy."""
    if C % sub == 0:
        candidates = [c for c in range(sub, C + 1, sub) if C % c == 0]
    else:
        candidates = [C]        # can't block cleanly; take the whole channel axis

    def footprint(c):
        io = 2 * 2 * c * hw_pad * itemsize      # in + out, double-buffered
        tmp = 3 * c * hw_pad * 4                # f32 temps inside the kernel body
        return io + tmp

    target_io = min(4 << 20, budget // 12)      # keep io blocks ~<= 4 MiB
    fitting = [c for c in candidates
               if c * hw_pad * itemsize <= target_io and footprint(c) <= budget]
    c_blk = max(fitting) if fitting else min(candidates)

    # Prefer >= 8 grid steps (pipelining / megacore sharding), but never let a
    # block drop below ~512 KiB where the ~0.35 us per-step overhead dominates.
    while B * (C // c_blk) < 8:
        smaller = [c for c in candidates
                   if c < c_blk and c * hw_pad * itemsize >= (512 << 10)]
        if not smaller:
            break
        c_blk = max(smaller)
    return c_blk


def cin_pallas(x, gamma, beta, *, eps=1e-5):
    """x: (B, C, H, W) NCHW; gamma/beta: (B, C, 1, 1) or (B, C)."""
    B, C, H, W = x.shape
    HW = H * W
    hw_pad = max(128, ((HW + 127) // 128) * 128)   # lane-dense last dim

    x3 = x.reshape(B, C, HW)                       # free: NCHW contiguous over (H, W)
    if hw_pad != HW:
        x3 = jnp.pad(x3, ((0, 0), (0, 0), (0, hw_pad - HW)))
    g3 = jnp.reshape(gamma, (B, C, 1)).astype(jnp.float32)   # keep affine in f32
    b3 = jnp.reshape(beta, (B, C, 1)).astype(jnp.float32)

    itemsize = jnp.dtype(x.dtype).itemsize
    budget = _vmem_budget_bytes()
    c_blk = _pick_c_blk(B, C, hw_pad, itemsize, _sublane_tile(x.dtype), budget)
    grid = (B, C // c_blk)

    kern = functools.partial(_cin_kernel, eps=eps, hw=HW, c_blk=c_blk)
    out3 = pl.pallas_call(
        kern,
        out_shape=jax.ShapeDtypeStruct((B, C, hw_pad), x.dtype),
        grid=grid,
        in_specs=[
            pl.BlockSpec((1, c_blk, hw_pad), lambda bi, ci: (bi, ci, 0)),
            # Whole per-batch affine row; block index constant over ci, so the
            # pipeline only re-fetches it when the batch index changes.
            pl.BlockSpec((1, C, 1), lambda bi, ci: (bi, 0, 0)),
            pl.BlockSpec((1, C, 1), lambda bi, ci: (bi, 0, 0)),
        ],
        out_specs=pl.BlockSpec((1, c_blk, hw_pad), lambda bi, ci: (bi, ci, 0)),
        compiler_params=pltpu.CompilerParams(
            dimension_semantics=("parallel", "parallel"),
            vmem_limit_bytes=int(budget),
        ),
    )(x3, g3, b3)

    if hw_pad != HW:
        out3 = out3[:, :, :HW]
    return out3.reshape(B, C, H, W)


# ------------------------- pure-JAX reference ------------------------------
def _ref_cin(x, gamma, beta, eps=1e-5):
    mean = jnp.mean(x, axis=(2, 3), keepdims=True)
    n = x.shape[2] * x.shape[3]
    var = jnp.sum((x - mean) ** 2, axis=(2, 3), keepdims=True) / (n - 1)
    std = jnp.sqrt(var)
    gamma = jnp.reshape(gamma, (x.shape[0], x.shape[1], 1, 1))
    beta = jnp.reshape(beta, (x.shape[0], x.shape[1], 1, 1))
    return (x - mean) / (std + eps) * gamma + beta


if __name__ == "__main__":
    B, C, H, W = 2, 4, 16, 16

    key = jax.random.PRNGKey(0)
    kx, kg, kb = jax.random.split(key, 3)
    x = jax.random.normal(kx, (B, C, H, W), jnp.float32)                 # NCHW
    gamma = 1.0 + 0.3 * jax.random.normal(kg, (B, C, 1, 1), jnp.float32)
    beta = 0.2 * jax.random.normal(kb, (B, C, 1, 1), jnp.float32)

    out = jax.jit(cin_pallas)(x, gamma, beta)
    out = jax.block_until_ready(out)

    ref = _ref_cin(x, gamma, beta)
    assert out.shape == (B, C, H, W)
    assert jnp.allclose(out, ref, atol=1e-3, rtol=1e-3), "mismatch vs reference"

    print("KERNEL_OK")
</pallas_src>

<mosaic_0001>
module attributes {stable_mosaic.version = 11 : i64} {
  func.func @_cin_kernel(%arg0: i32, %arg1: i32, %arg2: memref<1x4x256xf32, #tpu.memory_space<vmem>>, %arg3: memref<1x4x1xf32, #tpu.memory_space<vmem>>, %arg4: memref<1x4x1xf32, #tpu.memory_space<vmem>>, %arg5: memref<1x4x256xf32, #tpu.memory_space<vmem>>) attributes {dimension_semantics = [#tpu.dimension_semantics<parallel>, #tpu.dimension_semantics<parallel>], iteration_bounds = array<i64: 2, 1>, scalar_prefetch = 0 : i64, scratch_operands = 0 : i64, tpu.core_type = #tpu.core_type<tc>, window_params = [{transform_indices = @transform_0, window_bounds = array<i64: 1, 4, 256>}, {transform_indices = @transform_1, window_bounds = array<i64: 1, 4, 1>}, {transform_indices = @transform_2, window_bounds = array<i64: 1, 4, 1>}, {transform_indices = @transform_3, window_bounds = array<i64: 1, 4, 256>}]} {
    %c0 = arith.constant 0 : index
    %c0_0 = arith.constant 0 : index
    %c0_1 = arith.constant 0 : index
    %0 = vector.load %arg2[%c0, %c0_0, %c0_1] : memref<1x4x256xf32, #tpu.memory_space<vmem>>, vector<1x4x256xf32>
    %1 = vector.shape_cast %0 : vector<1x4x256xf32> to vector<4x256xf32>
    %c0_2 = arith.constant 0 : index
    %c0_3 = arith.constant 0 : index
    %c0_4 = arith.constant 0 : index
    %2 = vector.load %arg3[%c0_2, %c0_3, %c0_4] : memref<1x4x1xf32, #tpu.memory_space<vmem>>, vector<1x4x1xf32>
    %3 = vector.shape_cast %2 : vector<1x4x1xf32> to vector<4x1xf32>
    %c0_5 = arith.constant 0 : index
    %c0_6 = arith.constant 0 : index
    %c0_7 = arith.constant 0 : index
    %4 = vector.load %arg4[%c0_5, %c0_6, %c0_7] : memref<1x4x1xf32, #tpu.memory_space<vmem>>, vector<1x4x1xf32>
    %5 = vector.shape_cast %4 : vector<1x4x1xf32> to vector<4x1xf32>
    %cst = arith.constant dense<0.000000e+00> : vector<4xf32>
    %6 = vector.multi_reduction <add>, %1, %cst [1] : vector<4x256xf32> to vector<4xf32>
    %7 = vector.shape_cast %6 : vector<4xf32> to vector<4x1xf32>
    %cst_8 = arith.constant 3.906250e-03 : f32
    %8 = vector.broadcast %cst_8 : f32 to vector<4x1xf32>
    %9 = arith.mulf %7, %8 : vector<4x1xf32>
    %10 = vector.broadcast %9 : vector<4x1xf32> to vector<4x256xf32>
    %11 = arith.subf %1, %10 : vector<4x256xf32>
    %12 = arith.mulf %11, %11 : vector<4x256xf32>
    %cst_9 = arith.constant dense<0.000000e+00> : vector<4xf32>
    %13 = vector.multi_reduction <add>, %12, %cst_9 [1] : vector<4x256xf32> to vector<4xf32>
    %14 = vector.shape_cast %13 : vector<4xf32> to vector<4x1xf32>
    %cst_10 = arith.constant 0.00392156886 : f32
    %15 = vector.broadcast %cst_10 : f32 to vector<4x1xf32>
    %16 = arith.mulf %14, %15 : vector<4x1xf32>
    %17 = math.sqrt %16 : vector<4x1xf32>
    %cst_11 = arith.constant 9.99999974E-6 : f32
    %18 = vector.broadcast %cst_11 : f32 to vector<4x1xf32>
    %19 = arith.addf %17, %18 : vector<4x1xf32>
    %20 = tpu.reciprocal %19 {approx = true} : vector<4x1xf32> -> vector<4x1xf32>
    %21 = arith.mulf %19, %20 : vector<4x1xf32>
    %cst_12 = arith.constant 2.000000e+00 : f32
    %22 = vector.broadcast %cst_12 : f32 to vector<4x1xf32>
    %23 = arith.subf %22, %21 : vector<4x1xf32>
    %24 = arith.mulf %20, %23 : vector<4x1xf32>
    %25 = arith.mulf %3, %24 : vector<4x1xf32>
    %26 = arith.mulf %9, %25 : vector<4x1xf32>
    %27 = arith.subf %5, %26 : vector<4x1xf32>
    %28 = vector.broadcast %25 : vector<4x1xf32> to vector<4x256xf32>
    %29 = arith.mulf %1, %28 : vector<4x256xf32>
    %30 = vector.broadcast %27 : vector<4x1xf32> to vector<4x256xf32>
    %31 = arith.addf %29, %30 : vector<4x256xf32>
    %c0_13 = arith.constant 0 : index
    %c0_14 = arith.constant 0 : index
    %c0_15 = arith.constant 0 : index
    %32 = vector.load %arg5[%c0_13, %c0_14, %c0_15] : memref<1x4x256xf32, #tpu.memory_space<vmem>>, vector<1x4x256xf32>
    %33 = vector.shape_cast %32 : vector<1x4x256xf32> to vector<4x256xf32>
    %34 = vector.shape_cast %31 : vector<4x256xf32> to vector<1x4x256xf32>
    tpu.vector_store %arg5[%c0_13, %c0_14, %c0_15], %34 {strides = array<i32>} : memref<1x4x256xf32, #tpu.memory_space<vmem>>, vector<1x4x256xf32>,
    return
  }
  func.func @transform_0(%arg0: i32, %arg1: i32) -> (i32, i32, i32) {
    %c0_i32 = arith.constant 0 : i32
    %c0_i32_0 = arith.constant 0 : i32
    return %arg0, %arg1, %c0_i32 : i32, i32, i32
  }
  func.func @transform_1(%arg0: i32, %arg1: i32) -> (i32, i32, i32) {
    %c0_i32 = arith.constant 0 : i32
    %c0_i32_0 = arith.constant 0 : i32
    %c0_i32_1 = arith.constant 0 : i32
    return %arg0, %c0_i32, %c0_i32_0 : i32, i32, i32
  }
  func.func @transform_2(%arg0: i32, %arg1: i32) -> (i32, i32, i32) {
    %c0_i32 = arith.constant 0 : i32
    %c0_i32_0 = arith.constant 0 : i32
    %c0_i32_1 = arith.constant 0 : i32
    return %arg0, %c0_i32, %c0_i32_0 : i32, i32, i32
  }
  func.func @transform_3(%arg0: i32, %arg1: i32) -> (i32, i32, i32) {
    %c0_i32 = arith.constant 0 : i32
    %c0_i32_0 = arith.constant 0 : i32
    return %arg0, %arg1, %c0_i32 : i32, i32, i32
  }
}

</mosaic_0001>

<bundles_post_ra>
// kernel: cin_pallas.1
= control target key start
LH: loop header
LB: loop body
LE: loop exit
PB: predicated region body
PF: predicated region fallthrough
CT: control target
= control target key end

     0   :  { %s526_s12 = smov 0   ;;  %s528_s13 = smov 0   ;;  %s577_s0 = inlined_call_operand.vmem [shape: f32[2,4,256], index: 0, kind: input, shape index: {}]   ;;  %s578_s1 = inlined_call_operand.vmem [shape: f32[2,4,1], index: 1, kind: input, shape index: {}]   ;;  %s579_s2 = inlined_call_operand.vmem [shape: f32[2,4,1], index: 2, kind: input, shape index: {}]   ;;  %s580_s3 = inlined_call_operand.vmem [shape: f32[2,4,256], index: 3, kind: output, shape index: {}]  }
   0x1   :  { %s530_s14 = smov 0  }
   0x2 LB: > { %s25_s15 = sadd.s32 1, %s498_s13  ;;  %p436_p0 = scmp.ge.s32.totalorder %s502_s14, 1  ;;  %s502_s14 = sphi %s530_s14, %s13_s14   ;;  %s498_s13 = sphi %s528_s13, %s582_s13   ;;  %s494_s12 = sphi %s526_s12, %s581_s12  }
   0x3   : > { %p27_p1 = scmp.ge.s32.totalorder %s25_s15, 2  ;;  %p175_p2 = scmp.lt.s32.totalorder %s502_s14, 3 }
   0x5   : > { %s584_s15 = smov (%p27_p1, %s25_s15), 0  ;;  %p176_p3 = pnand %p436_p0, %p175_p2 }
   0x6   : > { %p215_p4 = scmp.lt.s32.totalorder (!%p176_p3), %s494_s12, 1  ;;  %vm247_vm0 = vcmask (!%p176_p3), 1043456   ;;  %v504_v5 = vmov (!%p176_p3), 839922192   ;;  %v258_v7 = vlaneseq (!%p176_p3)  ;;  %v505_v20 = vmov (!%p176_p3), 0  }
   0x7   : > { %179 = sbr.rel (%p176_p3) target bundleno = 495 (0x1ef), region = 32  ;;  %v256_v6 = vunpack.c.l.s4 (!%p176_p3), %v504_v5  ;;  %473 = vset.pattern.permute.xlu1 (!%p176_p3), %v505_v20  ;;  %474 = vset.pattern.permute.xlu0 (!%p176_p3), %v505_v20 }
   0x8   : > { %v259_v9 = vshrl.u32 (!%p176_p3), %v258_v7, 7 }
   0x9   : > { %v257_v8 = vunpack.c.0.s8 (!%p176_p3), %v256_v6 }
   0xb   : > { %v260_v10 = vsub.s32 (!%p176_p3), %v257_v8, %v259_v9 }
   0xe   : > { %s586_s12 = smov (!%p215_p4, %s494_s12), 1 }
   0xf   : > { %s445_s16 = sshll.u32 %s586_s12, 3  ;;  %s439_s20 = sshll.u32 %s586_s12, 2 }
  0x10   : > { %s223_s19 = scalar_lea.vmem %s577_s0, %s445_s16  ;;  %s227_s23 = scalar_lea.vmem %s578_s1, %s439_s20 }
  0x11   : > { %v241_v0 = vld [vmem:[%s223_s19] sm:$0xff]  ;;  %s231_s26 = scalar_lea.vmem %s579_s2, %s439_s20  ;;  %s240_s29 = scalar_lea.vmem %s580_s3, %s445_s16 }
  0x12   : > { %v245_v1 = vcombine.high %v241_v0, %v241_v0  ;;  %v248_v2 = vsel %vm247_vm0, %v241_v0, 0.0  ;;  %v242_v32 = vld [vmem:[%s227_s23] sm:$0xf] }
  0x13   : > { %v243_v35 = vld [vmem:[%s231_s26] sm:$0xf] }
  0x14   : > { %v249_v3 = vsel %vm247_vm0, %v245_v1, 0.0 }
  0x15   : > { %v250_v4 = vadd.f32 %v249_v3, %v248_v2 }
  0x17   : > { %251 = vadd.xlane.f32.xlu0 %v250_v4 }
  0xa4   : > { %v252_v11 = vpop.xlane.xlu0 %251 }
  0xa5   : > { %v253_v12 = vmul.f32 0.00390625, %v252_v11 }
  0xa7   : > { %v261_v13 = vrot.slane %v253_v12, %v260_v10 }
  0xa9   : > { %v263_v14 = vsub.f32 %v241_v0, %v261_v13 }
  0xab   : > { %v264_v15 = vmul.f32 %v263_v14, %v263_v14 }
  0xad   : > { %v266_v16 = vcombine.high %v264_v15, %v264_v15  ;;  %v268_v17 = vsel %vm247_vm0, %v264_v15, 0.0 }
  0xaf   : > { %v269_v18 = vsel %vm247_vm0, %v266_v16, 0.0 }
  0xb0   : > { %v270_v19 = vadd.f32 %v269_v18, %v268_v17 }
  0xb2   : > { %271 = vadd.xlane.f32.xlu0 %v270_v19 }
 0x13f   : > { %v272_v21 = vpop.xlane.xlu0 %271 }
 0x140   : > { %v273_v22 = vmul.f32 0.003921569, %v272_v21 }
 0x142   : > { %476 = vrsqrt.f32 %v273_v22  ;;  %vm276_vm1 = vcmp.eq.f32.partialorder %v273_v22, inf  ;;  %v279_v25 = vand.u32 2147483648, %v273_v22  ;;  %vm278_vm2 = vcmp.eq.f32.partialorder %v273_v22, 0.0 }
 0x14c   : > { %v477_v23 = vpop.eup %476 }
 0x14d   : > { %v275_v24 = vmul.f32 %v477_v23, %v273_v22 }
 0x14f   : > { %v277_v26 = vsel %vm276_vm1, %v273_v22, %v275_v24 }
 0x150   : > { %v280_v27 = vsel %vm278_vm2, %v279_v25, %v277_v26 }
 0x151   : > { %v281_v28 = vadd.f32 1e-05, %v280_v27 }
 0x153   : > { %478 = vrcp.f32 %v281_v28 }
 0x15d   : > { %v479_v29 = vpop.eup %478 }
 0x15e   : > { %v283_v30 = vmul.f32 %v479_v29, %v281_v28 }
 0x160   : > { %v284_v31 = vsub.f32 2.0, %v283_v30 }
 0x162   : > { %v285_v33 = vmul.f32 %v479_v29, %v284_v31 }
 0x164   : > { %v286_v34 = vmul.f32 %v285_v33, %v242_v32 }
 0x166   : > { %291 = vperm.xlu1 %473, %v286_v34   ;;  %v287_v36 = vmul.f32 %v286_v34, %v253_v12 }
 0x168   : > { %v288_v37 = vsub.f32 %v243_v35, %v287_v36 }
 0x16a   : > { %304 = vperm.xlu1 %473, %v288_v37  }
 0x1e5   : > { %v292_v38 = vpop.permute.xlu1 %291 }
 0x1e6   : > { %v299_v39 = vrot.slane %v292_v38, %v260_v10 }
 0x1e8   : > { %v301_v41 = vmul.f32 %v299_v39, %v241_v0 }
 0x1e9   : > { %v305_v40 = vpop.permute.xlu1 %304 }
 0x1ea   : > { %v312_v42 = vrot.slane %v305_v40, %v260_v10 }
 0x1ec   : > { %v314_v43 = vadd.f32 %v312_v42, %v301_v41 }
 0x1ee   : > { %315 = vst [vmem:[%s240_s29] sm:$0xff] %v314_v43 }
 0x1ef PF: > { %s13_s14 = sadd.s32 1, %s502_s14   ;;  %s581_s12 = smov %s498_s13 }
 0x1f0   : > { %p10_p5 = scmp.ge.s32.totalorder %s13_s14, 4   ;;  %s582_s13 = smov %s584_s15 }
 0x1f2   :  { %12 = sbr.rel (!%p10_p5) target bundleno = 2 (0x2), region = 68 }

</bundles_post_ra>
